<compile_context>
chip_gen: v7x
topology: tpu7x:2x2x1
jax: 0.10.0
libtpu: 0.0.40
codegen_flags: <defaults>
</compile_context>

<pallas_src>
import jax
import jax.numpy as jnp
from jax.experimental import pallas as pl
from jax.experimental.pallas import tpu as pltpu

INPUT_DIM = 11
HIDDEN_DIMS = [32, 16]     # -> hidden widths 32, 16, 32, then final Linear back to 11
BN_EPS = 1e-5
LEAKY_SLOPE = 0.8
TILE_B = 128               # batch columns per grid step (lane axis)


def _hidden_widths(hidden_dims):
    return hidden_dims + hidden_dims[::-1][1:]


# ----------------------------------------------------------------------------- kernel
def deep_component_kernel(x_ref, *refs):
    """refs = [w0, b0, w1, b1, ..., w_last, b_last, out_ref].

    x_ref:  (in_dim, TILE_B)   activations, batch on lanes
    w_i:    (out_f, in_f)      BN-folded weight (natural torch layout)
    b_i:    (out_f, 1)         BN-folded bias (column vector, lane-broadcast)
    out_ref:(out_dim, TILE_B)
    """
    out_ref = refs[-1]
    params = refs[:-1]
    n_layers = len(params) // 2

    h = x_ref[...].astype(jnp.float32)                      # (in_f, TILE_B)
    for i in range(n_layers):
        w = params[2 * i][...]
        b = params[2 * i + 1][...]
        h = jnp.dot(w, h, preferred_element_type=jnp.float32) + b   # (out_f, TILE_B)
        if i < n_layers - 1:
            # LeakyReLU(negative_slope=0.8); Dropout(p=0) is the identity
            h = jnp.where(h >= 0.0, h, LEAKY_SLOPE * h)
    out_ref[...] = h.astype(out_ref.dtype)


# ------------------------------------------------------------------------- parameters
def init_params(key, input_dim, hidden_dims):
    """Raw (un-folded) parameters mirroring the PyTorch module.

    Per hidden layer: W (in,out), b (1,out), gamma, beta, running_mean, running_var
    (each (1,out)); final Linear: W_out (in, input_dim), b_out (1, input_dim).
    """
    widths = _hidden_widths(hidden_dims)
    params = []
    d = input_dim
    for w_out in widths:
        key, k1, k2, k3, k4, k5, k6 = jax.random.split(key, 7)
        scale = 1.0 / jnp.sqrt(jnp.float32(d))
        params.append(jax.random.uniform(k1, (d, w_out), jnp.float32, -scale, scale))   # W
        params.append(jax.random.uniform(k2, (1, w_out), jnp.float32, -scale, scale))   # b
        params.append(1.0 + 0.1 * jax.random.normal(k3, (1, w_out), jnp.float32))       # gamma
        params.append(0.1 * jax.random.normal(k4, (1, w_out), jnp.float32))             # beta
        params.append(0.1 * jax.random.normal(k5, (1, w_out), jnp.float32))             # running_mean
        params.append(1.0 + 0.1 * jax.random.uniform(k6, (1, w_out), jnp.float32))      # running_var
        d = w_out
    key, k1, k2 = jax.random.split(key, 3)
    scale = 1.0 / jnp.sqrt(jnp.float32(d))
    params.append(jax.random.uniform(k1, (d, input_dim), jnp.float32, -scale, scale))   # W_out
    params.append(jax.random.uniform(k2, (1, input_dim), jnp.float32, -scale, scale))   # b_out
    return params


def fold_bn_params(raw_params):
    """One-time transform: fold eval-mode BN into each Linear and transpose to the
    (out, in) / (out, 1) layout the lane-dense kernel expects."""
    n_hidden = (len(raw_params) - 2) // 6
    folded = []
    for i in range(n_hidden):
        w, b, g, be, mu, var = raw_params[6 * i: 6 * i + 6]
        s = g * jax.lax.rsqrt(var + BN_EPS)          # (1, out)
        w_f = w * s                                  # (in, out), column-scaled
        b_f = (b - mu) * s + be                      # (1, out)
        folded.append(jnp.asarray(w_f.T))            # (out, in)
        folded.append(jnp.asarray(b_f.T))            # (out, 1)
    w_out, b_out = raw_params[-2], raw_params[-1]
    folded.append(jnp.asarray(w_out.T))              # (out_dim, in)
    folded.append(jnp.asarray(b_out.T))              # (out_dim, 1)
    return folded


# ---------------------------------------------------------------------------- wrapper
def deep_component_forward(x, folded_params, *, tile_b=TILE_B):
    batch, in_dim = x.shape
    out_dim = folded_params[-1].shape[0]

    num_tiles = pl.cdiv(batch, tile_b)
    padded = num_tiles * tile_b

    # Transposed, lane-dense layout: (features, batch), zero-padded batch columns.
    x_t = jnp.pad(x.T.astype(jnp.float32), ((0, 0), (0, padded - batch)))

    # Activation tiles move with the grid; tiny folded params stay resident
    # (full-array blocks with constant block index).
    x_spec = pl.BlockSpec((in_dim, tile_b), lambda i: (0, i))
    param_specs = [pl.BlockSpec(p.shape, lambda i: (0, 0)) for p in folded_params]
    out_spec = pl.BlockSpec((out_dim, tile_b), lambda i: (0, i))

    y_t = pl.pallas_call(
        deep_component_kernel,
        out_shape=jax.ShapeDtypeStruct((out_dim, padded), jnp.float32),
        grid=(num_tiles,),
        in_specs=[x_spec] + param_specs,
        out_specs=out_spec,
        compiler_params=pltpu.CompilerParams(dimension_semantics=("parallel",)),
    )(x_t, *folded_params)

    return y_t[:, :batch].T.astype(x.dtype)


# -------------------------------------------------------------------------- reference
def _reference_forward(x, raw_params):
    """Pure-JAX reference mirroring the PyTorch module (eval mode), un-folded params."""
    n_hidden = (len(raw_params) - 2) // 6
    h = x.astype(jnp.float32)
    for i in range(n_hidden):
        w, b, g, be, mu, var = raw_params[6 * i: 6 * i + 6]
        h = h @ w + b
        h = (h - mu) / jnp.sqrt(var + BN_EPS) * g + be
        h = jnp.where(h >= 0.0, h, LEAKY_SLOPE * h)
    return h @ raw_params[-2] + raw_params[-1]


if __name__ == "__main__":
    key = jax.random.PRNGKey(0)
    k_x, k_p = jax.random.split(key)

    batch = 200  # not a multiple of TILE_B -> exercises padding + 2-step grid
    x = jax.random.normal(k_x, (batch, INPUT_DIM), jnp.float32)

    raw_params = init_params(k_p, INPUT_DIM, HIDDEN_DIMS)
    folded_params = fold_bn_params(raw_params)      # one-time param transform

    y = deep_component_forward(x, folded_params)
    y = jax.block_until_ready(y)

    y_ref = _reference_forward(x, raw_params)
    assert y.shape == (batch, INPUT_DIM)
    assert jnp.allclose(y, y_ref, atol=1e-3, rtol=1e-3), "Pallas output mismatch vs reference"

    print("KERNEL_OK")
</pallas_src>

<mosaic_0001>
module attributes {stable_mosaic.version = 11 : i64} {
  func.func @deep_component_kernel(%arg0: i32, %arg1: memref<11x128xf32, #tpu.memory_space<vmem>>, %arg2: memref<32x11xf32, #tpu.memory_space<vmem>>, %arg3: memref<32x1xf32, #tpu.memory_space<vmem>>, %arg4: memref<16x32xf32, #tpu.memory_space<vmem>>, %arg5: memref<16x1xf32, #tpu.memory_space<vmem>>, %arg6: memref<32x16xf32, #tpu.memory_space<vmem>>, %arg7: memref<32x1xf32, #tpu.memory_space<vmem>>, %arg8: memref<11x32xf32, #tpu.memory_space<vmem>>, %arg9: memref<11x1xf32, #tpu.memory_space<vmem>>, %arg10: memref<11x128xf32, #tpu.memory_space<vmem>>) attributes {dimension_semantics = [#tpu.dimension_semantics<parallel>], iteration_bounds = array<i64: 2>, scalar_prefetch = 0 : i64, scratch_operands = 0 : i64, tpu.core_type = #tpu.core_type<tc>, window_params = [{transform_indices = @transform_0, window_bounds = array<i64: 11, 128>}, {pipeline_mode = #tpu.pipeline_mode<synchronous>, transform_indices = @transform_1, window_bounds = array<i64: 32, 11>}, {pipeline_mode = #tpu.pipeline_mode<synchronous>, transform_indices = @transform_2, window_bounds = array<i64: 32, 1>}, {pipeline_mode = #tpu.pipeline_mode<synchronous>, transform_indices = @transform_3, window_bounds = array<i64: 16, 32>}, {pipeline_mode = #tpu.pipeline_mode<synchronous>, transform_indices = @transform_4, window_bounds = array<i64: 16, 1>}, {pipeline_mode = #tpu.pipeline_mode<synchronous>, transform_indices = @transform_5, window_bounds = array<i64: 32, 16>}, {pipeline_mode = #tpu.pipeline_mode<synchronous>, transform_indices = @transform_6, window_bounds = array<i64: 32, 1>}, {pipeline_mode = #tpu.pipeline_mode<synchronous>, transform_indices = @transform_7, window_bounds = array<i64: 11, 32>}, {pipeline_mode = #tpu.pipeline_mode<synchronous>, transform_indices = @transform_8, window_bounds = array<i64: 11, 1>}, {transform_indices = @transform_9, window_bounds = array<i64: 11, 128>}]} {
    %c0 = arith.constant 0 : index
    %c0_0 = arith.constant 0 : index
    %0 = vector.load %arg1[%c0, %c0_0] : memref<11x128xf32, #tpu.memory_space<vmem>>, vector<11x128xf32>
    %c0_1 = arith.constant 0 : index
    %c0_2 = arith.constant 0 : index
    %1 = vector.load %arg2[%c0_1, %c0_2] : memref<32x11xf32, #tpu.memory_space<vmem>>, vector<32x11xf32>
    %c0_3 = arith.constant 0 : index
    %c0_4 = arith.constant 0 : index
    %2 = vector.load %arg3[%c0_3, %c0_4] : memref<32x1xf32, #tpu.memory_space<vmem>>, vector<32x1xf32>
    %cst = arith.constant dense<0.000000e+00> : vector<32x128xf32>
    %3 = tpu.matmul %1, %0, %cst {dimension_numbers = #tpu.dot_dimension_numbers<[1], [0], [0], [1], [0, 0, 1, 1], [], []>} : vector<32x11xf32>, vector<11x128xf32>, vector<32x128xf32> -> vector<32x128xf32>
    %4 = vector.broadcast %2 : vector<32x1xf32> to vector<32x128xf32>
    %5 = arith.addf %3, %4 : vector<32x128xf32>
    %cst_5 = arith.constant 0.000000e+00 : f32
    %6 = vector.broadcast %cst_5 : f32 to vector<32x128xf32>
    %7 = arith.cmpf oge, %5, %6 : vector<32x128xf32>
    %cst_6 = arith.constant 8.000000e-01 : f32
    %8 = vector.broadcast %cst_6 : f32 to vector<32x128xf32>
    %9 = arith.mulf %8, %5 : vector<32x128xf32>
    %10 = arith.select %7, %5, %9 : vector<32x128xi1>, vector<32x128xf32>
    %c0_7 = arith.constant 0 : index
    %c0_8 = arith.constant 0 : index
    %11 = vector.load %arg4[%c0_7, %c0_8] : memref<16x32xf32, #tpu.memory_space<vmem>>, vector<16x32xf32>
    %c0_9 = arith.constant 0 : index
    %c0_10 = arith.constant 0 : index
    %12 = vector.load %arg5[%c0_9, %c0_10] : memref<16x1xf32, #tpu.memory_space<vmem>>, vector<16x1xf32>
    %cst_11 = arith.constant dense<0.000000e+00> : vector<16x128xf32>
    %13 = tpu.matmul %11, %10, %cst_11 {dimension_numbers = #tpu.dot_dimension_numbers<[1], [0], [0], [1], [0, 0, 1, 1], [], []>} : vector<16x32xf32>, vector<32x128xf32>, vector<16x128xf32> -> vector<16x128xf32>
    %14 = vector.broadcast %12 : vector<16x1xf32> to vector<16x128xf32>
    %15 = arith.addf %13, %14 : vector<16x128xf32>
    %cst_12 = arith.constant 0.000000e+00 : f32
    %16 = vector.broadcast %cst_12 : f32 to vector<16x128xf32>
    %17 = arith.cmpf oge, %15, %16 : vector<16x128xf32>
    %cst_13 = arith.constant 8.000000e-01 : f32
    %18 = vector.broadcast %cst_13 : f32 to vector<16x128xf32>
    %19 = arith.mulf %18, %15 : vector<16x128xf32>
    %20 = arith.select %17, %15, %19 : vector<16x128xi1>, vector<16x128xf32>
    %c0_14 = arith.constant 0 : index
    %c0_15 = arith.constant 0 : index
    %21 = vector.load %arg6[%c0_14, %c0_15] : memref<32x16xf32, #tpu.memory_space<vmem>>, vector<32x16xf32>
    %c0_16 = arith.constant 0 : index
    %c0_17 = arith.constant 0 : index
    %22 = vector.load %arg7[%c0_16, %c0_17] : memref<32x1xf32, #tpu.memory_space<vmem>>, vector<32x1xf32>
    %cst_18 = arith.constant dense<0.000000e+00> : vector<32x128xf32>
    %23 = tpu.matmul %21, %20, %cst_18 {dimension_numbers = #tpu.dot_dimension_numbers<[1], [0], [0], [1], [0, 0, 1, 1], [], []>} : vector<32x16xf32>, vector<16x128xf32>, vector<32x128xf32> -> vector<32x128xf32>
    %24 = vector.broadcast %22 : vector<32x1xf32> to vector<32x128xf32>
    %25 = arith.addf %23, %24 : vector<32x128xf32>
    %cst_19 = arith.constant 0.000000e+00 : f32
    %26 = vector.broadcast %cst_19 : f32 to vector<32x128xf32>
    %27 = arith.cmpf oge, %25, %26 : vector<32x128xf32>
    %cst_20 = arith.constant 8.000000e-01 : f32
    %28 = vector.broadcast %cst_20 : f32 to vector<32x128xf32>
    %29 = arith.mulf %28, %25 : vector<32x128xf32>
    %30 = arith.select %27, %25, %29 : vector<32x128xi1>, vector<32x128xf32>
    %c0_21 = arith.constant 0 : index
    %c0_22 = arith.constant 0 : index
    %31 = vector.load %arg8[%c0_21, %c0_22] : memref<11x32xf32, #tpu.memory_space<vmem>>, vector<11x32xf32>
    %c0_23 = arith.constant 0 : index
    %c0_24 = arith.constant 0 : index
    %32 = vector.load %arg9[%c0_23, %c0_24] : memref<11x1xf32, #tpu.memory_space<vmem>>, vector<11x1xf32>
    %cst_25 = arith.constant dense<0.000000e+00> : vector<11x128xf32>
    %33 = tpu.matmul %31, %30, %cst_25 {dimension_numbers = #tpu.dot_dimension_numbers<[1], [0], [0], [1], [0, 0, 1, 1], [], []>} : vector<11x32xf32>, vector<32x128xf32>, vector<11x128xf32> -> vector<11x128xf32>
    %34 = vector.broadcast %32 : vector<11x1xf32> to vector<11x128xf32>
    %35 = arith.addf %33, %34 : vector<11x128xf32>
    %c0_26 = arith.constant 0 : index
    %c0_27 = arith.constant 0 : index
    %36 = vector.load %arg10[%c0_26, %c0_27] : memref<11x128xf32, #tpu.memory_space<vmem>>, vector<11x128xf32>
    tpu.vector_store %arg10[%c0_26, %c0_27], %35 {strides = array<i32>} : memref<11x128xf32, #tpu.memory_space<vmem>>, vector<11x128xf32>,
    return
  }
  func.func @transform_0(%arg0: i32) -> (i32, i32) {
    %c0_i32 = arith.constant 0 : i32
    %c0_i32_0 = arith.constant 0 : i32
    return %c0_i32, %arg0 : i32, i32
  }
  func.func @transform_1(%arg0: i32) -> (i32, i32) {
    %c0_i32 = arith.constant 0 : i32
    %c0_i32_0 = arith.constant 0 : i32
    %c0_i32_1 = arith.constant 0 : i32
    return %c0_i32, %c0_i32_0 : i32, i32
  }
  func.func @transform_2(%arg0: i32) -> (i32, i32) {
    %c0_i32 = arith.constant 0 : i32
    %c0_i32_0 = arith.constant 0 : i32
    %c0_i32_1 = arith.constant 0 : i32
    return %c0_i32, %c0_i32_0 : i32, i32
  }
  func.func @transform_3(%arg0: i32) -> (i32, i32) {
    %c0_i32 = arith.constant 0 : i32
    %c0_i32_0 = arith.constant 0 : i32
    %c0_i32_1 = arith.constant 0 : i32
    return %c0_i32, %c0_i32_0 : i32, i32
  }
  func.func @transform_4(%arg0: i32) -> (i32, i32) {
    %c0_i32 = arith.constant 0 : i32
    %c0_i32_0 = arith.constant 0 : i32
    %c0_i32_1 = arith.constant 0 : i32
    return %c0_i32, %c0_i32_0 : i32, i32
  }
  func.func @transform_5(%arg0: i32) -> (i32, i32) {
    %c0_i32 = arith.constant 0 : i32
    %c0_i32_0 = arith.constant 0 : i32
    %c0_i32_1 = arith.constant 0 : i32
    return %c0_i32, %c0_i32_0 : i32, i32
  }
  func.func @transform_6(%arg0: i32) -> (i32, i32) {
    %c0_i32 = arith.constant 0 : i32
    %c0_i32_0 = arith.constant 0 : i32
    %c0_i32_1 = arith.constant 0 : i32
    return %c0_i32, %c0_i32_0 : i32, i32
  }
  func.func @transform_7(%arg0: i32) -> (i32, i32) {
    %c0_i32 = arith.constant 0 : i32
    %c0_i32_0 = arith.constant 0 : i32
    %c0_i32_1 = arith.constant 0 : i32
    return %c0_i32, %c0_i32_0 : i32, i32
  }
  func.func @transform_8(%arg0: i32) -> (i32, i32) {
    %c0_i32 = arith.constant 0 : i32
    %c0_i32_0 = arith.constant 0 : i32
    %c0_i32_1 = arith.constant 0 : i32
    return %c0_i32, %c0_i32_0 : i32, i32
  }
  func.func @transform_9(%arg0: i32) -> (i32, i32) {
    %c0_i32 = arith.constant 0 : i32
    %c0_i32_0 = arith.constant 0 : i32
    return %c0_i32, %arg0 : i32, i32
  }
}

</mosaic_0001>

<bundles_post_ra>
// kernel: tpu_custom_call.1
= control target key start
LH: loop header
LB: loop body
LE: loop exit
PB: predicated region body
PF: predicated region fallthrough
CT: control target
= control target key end

     0   :  { %14 = vsyncpa [#allocation4], 0  ;;  %s1414_s0 = inlined_call_operand.vmem [shape: f32[11,256], index: 0, kind: input, shape index: {}]   ;;  %s1415_s1 = inlined_call_operand.vmem [shape: f32[32,11], index: 1, kind: input, shape index: {}]   ;;  %s1416_s2 = inlined_call_operand.vmem [shape: f32[32,1], index: 2, kind: input, shape index: {}]   ;;  %s1417_s3 = inlined_call_operand.vmem [shape: f32[16,32], index: 3, kind: input, shape index: {}]   ;;  %s1418_s4 = inlined_call_operand.vmem [shape: f32[16,1], index: 4, kind: input, shape index: {}]   ;;  %s1419_s5 = inlined_call_operand.vmem [shape: f32[32,16], index: 5, kind: input, shape index: {}]   ;;  %s1420_s6 = inlined_call_operand.vmem [shape: f32[32,1], index: 6, kind: input, shape index: {}]   ;;  %s1421_s7 = inlined_call_operand.vmem [shape: f32[11,32], index: 7, kind: input, shape index: {}]   ;;  %s1422_s8 = inlined_call_operand.vmem [shape: f32[11,1], index: 8, kind: input, shape index: {}]   ;;  %s1423_s9 = inlined_call_operand.hbm [shape: f32[11,256], index: 9, kind: output, shape index: {}]  }
   0x1   :  { %16 = vsyncpa [#allocation4 + $0x1], 0  ;;  %s1214_s30 = smov 0   ;;  %s1216_s10 = smov 0  }
   0x2   :  { %s1218_s11 = smov 0   ;;  %s1220_s12 = smov 0  }
   0x3 LB: > { %s930_s13 = sadd.s32 4294967295, %s1156_s12   ;;  %s931_s14 = sadd.s32 4294967294, %s1156_s12   ;;  %s1156_s12 = sphi %s1220_s12, %s1429_s12   ;;  %s1152_s11 = sphi %s1218_s11, %s1428_s11   ;;  %s1148_s10 = sphi %s1216_s10, %s1427_s10   ;;  %s1144_s30 = sphi %s1214_s30, %s1426_s30  }
   0x4   : > { %s1237_s15 = sadd.s32 1, %s1156_s12   ;;  %s29_s16 = sadd.s32 1, %s1152_s11 }
   0x5   : > { %s26_s17 = ssub.s32 %s1156_s12, %s1237_s15  ;;  %p36_p0 = scmp.ne.s32.totalorder %s1152_s11, %s1148_s10 }
   0x6   : > { %p27_p1 = scmp.eq.s32.totalorder %s26_s17, 0  ;;  %p37_p2 = scmp.eq.s32.totalorder %s1156_s12, 0 }
   0x7   : > { %p234_p3 = scmp.eq.s32.totalorder %s930_s13, 1  ;;  %p239_p4 = scmp.ne.s32.totalorder %s1148_s10, %s1144_s30 }
   0x8   : > { %s1250_s18 = scalar_select %p27_p1, %s1152_s11, %s29_s16  }
   0x9   : > { %p38_p5 = por %p37_p2, %p36_p0  ;;  %p1252_p6 = por %p234_p3, %p36_p0 }
   0xa   : > { %p240_p7 = scmp.eq.s32.totalorder %s931_s14, 1  ;;  %p933_p9 = scmp.ge.s32.totalorder %s1156_s12, 2 }
   0xc   : > { %p1256_p8 = por %p240_p7, %p239_p4  ;;  %280 = sbr.rel (%p933_p9) target bundleno = 26 (0x1a), region = 48 }
  0x13   : > { %283 = sbr.rel (!%p38_p5) target bundleno = 26 (0x1a), region = 52  ;;  %s285_s21 = sand.u32 (%p38_p5), 1, %s1152_s11  }
  0x14   : > { %s935_s22 = sshll.u32 (%p38_p5), %s1156_s12, 3  ;;  %s934_s23 = sshll.u32 (%p38_p5), %s285_s21, 4 }
  0x15   : > { %s289_s26 = scalar_lea.vmem (%p38_p5), %s1414_s0, %s935_s22  ;;  %s287_s27 = scalar_lea.vmem (%p38_p5), [#allocation2], %s934_s23 }
  0x16   : > { %v319_v0 = vld [vmem:[%s289_s26] sm:$0xff] (%p38_p5)  ;;  %v321_v1 = vld [vmem:[%s289_s26 + $0x10] sm:$0xff] (%p38_p5) }
  0x17   : > { %320 = vst [vmem:[%s287_s27] sm:$0xff] (%p38_p5), %v319_v0  ;;  %322 = vst [vmem:[%s287_s27 + $0x8] sm:$0xff] (%p38_p5), %v321_v1 }
  0x1a PF: > { %p936_p10 = scmp.ge.s32.totalorder %s1156_s12, 1  ;;  %p327_p11 = scmp.lt.s32.totalorder %s1156_s12, 3 }
  0x1c   : > { %p328_p12 = pnand %p936_p10, %p327_p11 }
  0x1d   : > { %s334_s28 = sand.u32 (!%p328_p12), 1, %s1148_s10   ;;  %vm412_vm0 = vcmask (!%p328_p12), 1042432   ;;  %v371_v2 = vld [vmem:[%s1415_s1] sm:$0xff] (!%p328_p12)  ;;  %vm399_vm1 = vcmask (!%p328_p12), 89088   ;;  %v1158_v3 = vmov (!%p328_p12), 0   ;;  %v377_v5 = vld [vmem:[%s1416_s2 + $0x10] sm:$0xff] (!%p328_p12) }
  0x1e   : > { %331 = sbr.rel (%p328_p12) target bundleno = 950 (0x3b6), region = 90  ;;  %s1276_s16 = sshll.u32 (!%p328_p12), %s334_s28, 4  ;;  %984 = vmatprep.mubr.msk.f32.mxu0 (!%p328_p12), %vm399_vm1, %v371_v2  ;;  %1092 = vset.pattern.permute.xlu0 (!%p328_p12), %v1158_v3  ;;  %v375_v4 = vld [vmem:[%s1416_s2] sm:$0xff] (!%p328_p12)  ;;  %vm1159_vm2 = vmmov (!%p328_p12), 1   ;;  %v376_v9 = vld [vmem:[%s1416_s2 + $0x8] sm:$0xff] (!%p328_p12)  ;;  %v378_v10 = vld [vmem:[%s1416_s2 + $0x18] sm:$0xff] (!%p328_p12) }
  0x1f   : > { %1093 = vset.pattern.permute.xlu1 (!%p328_p12), %v1158_v3  ;;  %s336_s24 = scalar_lea.vmem (!%p328_p12), [#allocation2], %s1276_s16  ;;  %vm1023_vm3 = vmpackc.low (!%p328_p12), %vm412_vm0, %vm1159_vm2  ;;  %381 = vperm.xlu0 (!%p328_p12), %1092, %v375_v4   ;;  %v372_v11 = vld [vmem:[%s1415_s1 + $0x8] sm:$0xff] (!%p328_p12)  ;;  %v373_v12 = vld [vmem:[%s1415_s1 + $0x10] sm:$0xff] (!%p328_p12)  ;;  %vm527_vm4 = vcmask (!%p328_p12), 261120   ;;  %vm643_vm9 = vcmask (!%p328_p12), 130048   ;;  %s368_s27 = scalar_lea.vmem (!%p328_p12), [#allocation3], %s1276_s16 }
  0x20   : > { %v369_v6 = vld [vmem:[%s336_s24] sm:$0xff] (!%p328_p12)  ;;  %v370_v7 = vld [vmem:[%s336_s24 + $0x8] sm:$0x7] (!%p328_p12)  ;;  %391 = vperm.xlu1 (!%p328_p12), %1093, %v377_v5   ;;  %s863_s29 = sshll.u32 (!%p328_p12), %s368_s27, 4  ;;  %s953_s14 = sshll.u32 (!%p328_p12), %s930_s13, 7  ;;  %s1363_s29 = int_to_ptr.vmem [resolvable:$true] %s863_s29 }
  0x21   : > { %v1022_v8 = vpack.c.bf16 (!%p328_p12), %v370_v7, %v369_v6  ;;  %v515_v13 = vld [vmem:[%s1418_s4] sm:$0xff] (!%p328_p12)  ;;  %v516_v14 = vld [vmem:[%s1418_s4 + $0x8] sm:$0xff] (!%p328_p12)  ;;  %v374_v15 = vld [vmem:[%s1415_s1 + $0x18] sm:$0xff] (!%p328_p12)  ;;  %s1368_s22 = scalar_lea.hbm (!%p328_p12), %s1423_s9, %s953_s14  ;;  %s1372_s13 = scalar_lea.sflag (!%p328_p12), [#allocation4], %s334_s28 }
  0x22   : > { %v619_v16 = vld [vmem:[%s1420_s6] sm:$0xff] (!%p328_p12)  ;;  %v620_v17 = vld [vmem:[%s1420_s6 + $0x8] sm:$0xff] (!%p328_p12)  ;;  %v621_v18 = vld [vmem:[%s1420_s6 + $0x10] sm:$0xff] (!%p328_p12)  ;;  %s1094_s16 = scalar_lea.vmem (!%p328_p12), %s1363_s29, 256  ;;  %s1160_s23 = smov (!%p328_p12), [#allocation3]  }
  0x23   : > { %1024 = vmatprep.subr.msk.bf16.mxu0 (!%p328_p12), %vm1023_vm3, %v1022_v8  ;;  %386 = vperm.xlu0 (!%p328_p12), %1092, %v376_v9   ;;  %v622_v19 = vld [vmem:[%s1420_s6 + $0x18] sm:$0xff] (!%p328_p12)  ;;  %v755_v20 = vld [vmem:[%s1422_s8] sm:$0xff] (!%p328_p12)  ;;  %v756_v21 = vld [vmem:[%s1422_s8 + $0x8] sm:$0x7] (!%p328_p12)  ;;  %p1095_p13 = scmp.ne.s32.totalorder (!%p328_p12), %s1363_s29, %s1094_s16  ;;  %s1098_s24 = sshll.u32 (!%p328_p12), %s1160_s23, 4  ;;  %s1099_s24 = int_to_ptr.vmem [resolvable:$false] %s1098_s24 }
  0x24   : > { %1027 = vmatpush3.bf16.msk.msra.mxu0 (!%p328_p12), %vm1023_vm3, %v1022_v8  ;;  %396 = vperm.xlu1 (!%p328_p12), %1093, %v378_v10   ;;  %v513_v22 = vld [vmem:[%s1417_s3] sm:$0xff] (!%p328_p12)  ;;  %v514_v45 = vld [vmem:[%s1417_s3 + $0x8] sm:$0xff] (!%p328_p12)  ;;  %v617_v59 = vld [vmem:[%s1419_s5 + $0x10] sm:$0xff] (!%p328_p12)  ;;  %s1100_s25 = scalar_lea.vmem (!%p328_p12), %s1099_s24, 512  ;;  %p1101_p2 = scmp.lt.s32.totalorder (!%p328_p12), %s1363_s29, %s1099_s24 }
  0x25   : > { %998 = vmatprep.mubr.msk.f32.mxu1 %vm527_vm4, %v513_v22  ;;  %v615_v46 = vld [vmem:[%s1419_s5] sm:$0xff]  ;;  %v616_v58 = vld [vmem:[%s1419_s5 + $0x8] sm:$0xff]  ;;  %v618_v60 = vld [vmem:[%s1419_s5 + $0x18] sm:$0xff]  ;;  %p1096_p0 = pnand %p1095_p13, %p1252_p6  ;;  %p1102_p3 = scmp.lt.s32.totalorder %s1100_s25, %s1094_s16 }
  0x26   : > { %v753_v61 = vld [vmem:[%s1421_s7] sm:$0xff] }
  0x27   : > { %985 = vmatmul.mubr.msk.f32.vlgmr.msra.gmra.mrb[0].mxu0 %vm399_vm1, %v372_v11  ;;  %519 = vperm.xlu0 %1092, %v515_v13   ;;  %p1097_p1 = pneg %p1096_p0  ;;  %p1103_p4 = por %p1102_p3, %p1101_p2 }
  0x28   : > { %987 = vmatprep.mubr.msk.f32.mxu0 %vm399_vm1, %v373_v12  ;;  %524 = vperm.xlu1 %1093, %v516_v14  }
  0x29   : > { %p1104_p5 = pnand %p1103_p4, %p1097_p1 }
  0x2b   : > { %988 = vmatmul.mubr.msk.f32.gmra.mrb[2].mxu0 %vm399_vm1, %v374_v15  ;;  %625 = vperm.xlu0 %1092, %v619_v16  }
  0x2c   : > { %630 = vperm.xlu1 %1093, %v620_v17   ;;  %1005 = vmatprep.mubr.msk.f32.mxu0 %vm643_vm9, %v615_v46 }
  0x2f   : > { %635 = vperm.xlu0 %1092, %v621_v18  }
  0x30   : > { %640 = vperm.xlu1 %1093, %v622_v19  }
  0x33   : > { %759 = vperm.xlu0 %1092, %v755_v20   ;;  %v754_v20 = vld [vmem:[%s1421_s7 + $0x8] sm:$0x7] }
  0x34   : > { %764 = vperm.xlu1 %1093, %v756_v21  }
  0x9e   : > { %v382_v23 = vpop.permute.xlu0 %381 }
  0x9f   : > { %v392_v24 = vpop.permute.xlu1 %391 }
  0xa2   : > { %v387_v25 = vpop.permute.xlu0 %386 }
  0xa3   : > { %v397_v31 = vpop.permute.xlu1 %396 }
  0xa6   : > { %v520_v49 = vpop.permute.xlu0 %519 }
  0xa7   : > { %v525_v47 = vpop.permute.xlu1 %524 }
  0xaa   : > { %v626_v63 = vpop.permute.xlu0 %625 }
  0xab   : > { %v631_v62 = vpop.permute.xlu1 %630 }
  0xae   : > { %v636_v8 = vpop.permute.xlu0 %635 }
  0xaf   : > { %v641_v5 = vpop.permute.xlu1 %640 }
  0xb3   : > { %v765_v21 = vpop.permute.xlu1 %764 }
  0xfa   : > { %v986_v26 = vpop.f32.mrb[0].mxu0 }
  0xfb   : > { %v488_v27 = vadd.f32 %v986_v26, %v387_v25  ;;  %v482_v28 = vpop.f32.mrb[1].mxu0 }
  0xfc   : > { %v483_v29 = vadd.f32 %v482_v28, %v382_v23  ;;  %v760_v23 = vpop.permute.xlu0 %759 }
  0xfd   : > { %v506_v30 = vmul.f32 0.8, %v488_v27  ;;  %vm502_vm5 = vcmp.ge.f32.partialorder %v488_v27, 0.0 }
  0xfe   : > { %v505_v32 = vmul.f32 0.8, %v483_v29  ;;  %v989_v33 = vpop.f32.mrb[2].mxu0  ;;  %vm501_vm6 = vcmp.ge.f32.partialorder %v483_v29, 0.0 }
  0xff   : > { %v498_v34 = vadd.f32 %v989_v33, %v397_v31  ;;  %v492_v35 = vpop.f32.mrb[3].mxu0  ;;  %v510_v36 = vsel %vm502_vm5, %v488_v27, %v506_v30 }
 0x100   : > { %v493_v37 = vadd.f32 %v492_v35, %v392_v24  ;;  %v509_v38 = vsel %vm501_vm6, %v483_v29, %v505_v32 }
 0x101   : > { %vm504_vm7 = vcmp.ge.f32.partialorder %v498_v34, 0.0  ;;  %v508_v39 = vmul.f32 0.8, %v498_v34  ;;  %v1028_v40 = vpack.c.bf16 %v510_v36, %v509_v38 }
 0x102   : > { %vm503_vm8 = vcmp.ge.f32.partialorder %v493_v37, 0.0  ;;  %v507_v41 = vmul.f32 0.8, %v493_v37 }
 0x103   : > { %1029 = vmatprep.subr.bf16.mxu1 %v1028_v40  ;;  %v512_v42 = vsel %vm504_vm7, %v498_v34, %v508_v39 }
 0x104   : > { %1031 = vmatpush3.bf16.msra.mxu1 %v1028_v40  ;;  %v511_v43 = vsel %vm503_vm8, %v493_v37, %v507_v41 }
 0x105   : > { %v1032_v44 = vpack.c.bf16 %v512_v42, %v511_v43 }
 0x107   : > { %1033 = vmatprep.subr.bf16.mxu1 %v1032_v44 }
 0x108   : > { %1035 = vmatpush3.bf16.msra.mxu1 %v1032_v44 }
 0x10b   : > { %999 = vmatmul.mubr.msk.f32.vlgmr.msra.gmra.mrb[0].mxu1 %vm527_vm4, %v514_v45 }
 0x10c   : > { %1019 = vmatprep.mubr.msk.f32.mxu1 %vm527_vm4, %v753_v61 }
 0x1de   : > { %v1000_v48 = vpop.f32.mrb[0].mxu1 }
 0x1df   : > { %v606_v50 = vadd.f32 %v1000_v48, %v525_v47  ;;  %v600_v51 = vpop.f32.mrb[1].mxu1 }
 0x1e0   : > { %v601_v52 = vadd.f32 %v600_v51, %v520_v49 }
 0x1e1   : > { %vm610_vm10 = vcmp.ge.f32.partialorder %v606_v50, 0.0  ;;  %v612_v53 = vmul.f32 0.8, %v606_v50 }
 0x1e2   : > { %vm609_vm11 = vcmp.ge.f32.partialorder %v601_v52, 0.0  ;;  %v611_v54 = vmul.f32 0.8, %v601_v52 }
 0x1e3   : > { %v614_v55 = vsel %vm610_vm10, %v606_v50, %v612_v53 }
 0x1e4   : > { %v613_v56 = vsel %vm609_vm11, %v601_v52, %v611_v54 }
 0x1e5   : > { %v1036_v57 = vpack.c.bf16 %v614_v55, %v613_v56 }
 0x1e7   : > { %1037 = vmatprep.subr.bf16.mxu0 %v1036_v57 }
 0x1e8   : > { %1039 = vmatpush3.bf16.msra.mxu0 %v1036_v57 }
 0x1eb   : > { %1006 = vmatmul.mubr.msk.f32.vlgmr.msra.gmra.mrb[4].mxu0 %vm643_vm9, %v616_v58 }
 0x1ec   : > { %1008 = vmatprep.mubr.msk.f32.mxu0 %vm643_vm9, %v617_v59 }
 0x1ef   : > { %1009 = vmatmul.mubr.msk.f32.gmra.mrb[6].mxu0 %vm643_vm9, %v618_v60 }
 0x2be   : > { %v1007_v0 = vpop.f32.mrb[4].mxu0 }
 0x2bf   : > { %v728_v1 = vadd.f32 %v1007_v0, %v631_v62  ;;  %v722_v2 = vpop.f32.mrb[5].mxu0 }
 0x2c0   : > { %v723_v3 = vadd.f32 %v722_v2, %v626_v63 }
 0x2c1   : > { %vm742_vm12 = vcmp.ge.f32.partialorder %v728_v1, 0.0  ;;  %v746_v4 = vmul.f32 0.8, %v728_v1 }
 0x2c2   : > { %vm741_vm13 = vcmp.ge.f32.partialorder %v723_v3, 0.0  ;;  %v745_v6 = vmul.f32 0.8, %v723_v3  ;;  %v1010_v7 = vpop.f32.mrb[6].mxu0 }
 0x2c3   : > { %v738_v9 = vadd.f32 %v1010_v7, %v641_v5  ;;  %v732_v10 = vpop.f32.mrb[7].mxu0  ;;  %v750_v11 = vsel %vm742_vm12, %v728_v1, %v746_v4 }
 0x2c4   : > { %v733_v12 = vadd.f32 %v732_v10, %v636_v8  ;;  %v749_v13 = vsel %vm741_vm13, %v723_v3, %v745_v6 }
 0x2c5   : > { %vm744_vm14 = vcmp.ge.f32.partialorder %v738_v9, 0.0  ;;  %v748_v14 = vmul.f32 0.8, %v738_v9  ;;  %v1040_v15 = vpack.c.bf16 %v750_v11, %v749_v13 }
 0x2c6   : > { %vm743_vm15 = vcmp.ge.f32.partialorder %v733_v12, 0.0  ;;  %v747_v16 = vmul.f32 0.8, %v733_v12 }
 0x2c7   : > { %1041 = vmatprep.subr.bf16.mxu1 %v1040_v15  ;;  %v752_v17 = vsel %vm744_vm14, %v738_v9, %v748_v14 }
 0x2c8   : > { %1043 = vmatpush3.bf16.msra.mxu1 %v1040_v15  ;;  %v751_v18 = vsel %vm743_vm15, %v733_v12, %v747_v16 }
 0x2c9   : > { %v1044_v19 = vpack.c.bf16 %v752_v17, %v751_v18 }
 0x2cb   : > { %1045 = vmatprep.subr.bf16.mxu1 %v1044_v19 }
 0x2cc   : > { %1047 = vmatpush3.bf16.msra.mxu1 %v1044_v19 }
 0x2cf   : > { %1020 = vmatmul.mubr.msk.f32.vlgmr.msra.gmra.mrb[2].mxu1 %vm527_vm4, %v754_v20 }
 0x3a2   : > { %v1021_v22 = vpop.f32.mrb[2].mxu1 }
 0x3a3   : > { %v845_v24 = vadd.f32 %v1021_v22, %v765_v21  ;;  %v839_v25 = vpop.f32.mrb[3].mxu1 }
 0x3a4   : > { %v840_v26 = vadd.f32 %v839_v25, %v760_v23 }
 0x3a5   : > { %849 = vst [vmem:[%s368_s27 + $0x8] sm:$0x7] %v845_v24 }
 0x3a6   : > { %848 = vst [vmem:[%s368_s27] sm:$0xff] %v840_v26 }
 0x3a7   : > { %1107 = shalt.err (!%p1104_p5)
}
 0x3a8   : > { %s1108_s28 = scalar_lea.hbm %s1368_s22, 256  ;;  %s1112_s14 = scalar_lea.hbm %s1423_s9, 512 }
 0x3a9   : > { %p1109_p7 = scmp.ne.s32.totalorder %s1368_s22, %s1108_s28  ;;  %p1113_p12 = scmp.lt.u32.totalorder %s1368_s22, %s1423_s9 }
 0x3aa   : > { %p1114_p13 = scmp.lt.u32.totalorder %s1112_s14, %s1108_s28  ;;  %p1116_p1 = scmp.lt.u32.totalorder %s1108_s28, %s1368_s22 }
 0x3ab   : > { %p1110_p10 = pnand %p1109_p7, %p1252_p6 }
 0x3ac   : > { %p1115_p0 = por %p1114_p13, %p1113_p12 }
 0x3ad   : > { %p1111_p11 = pneg %p1110_p10 }
 0x3ae   : > { %p1117_p2 = por %p1116_p1, %p1115_p0 }
 0x3b0   : > { %p1118_p3 = pnand %p1117_p2, %p1111_p11 }
 0x3b2   : > { %1121 = shalt.err (!%p1118_p3)
}
 0x3b3   : > { %s1161_s16 = smov 128   ;;  %s1162_s23 = smov 256  }
 0x3b4   : > { %s1163_s24 = smov 8  }
 0x3b5   : > { %1048 = dma.vmem_to_hbm [thread:$0]  (%p1252_p6), %s1363_s29, 256, %s1368_s22, %s1372_s13, %s1161_s16, %s1162_s23, %s1163_s24  }
 0x3b6 PF: > { %s878_s25 = sand.u32 1, %s1144_s30   ;;  %p1051_p4 = pnand %p933_p9, %p1256_p8 }
 0x3b7   : > { %s879_s28 = scalar_lea.sflag [#allocation4], %s878_s25 }
 0x3b8   : > { %1139 = dma.done.wait (!%p1051_p4), %s879_s28, 256  }
 0x3b9   : > { %1141 = vsyncadd (!%p1051_p4), %s879_s28, 4294967040  ;;  %p19_p5 = scmp.ge.s32.totalorder %s1237_s15, 4   ;;  %s1426_s30 = smov %s1148_s10 }
 0x3ba   : > { %s1427_s10 = smov %s1152_s11  ;;  %s1428_s11 = smov %s1250_s18 }
 0x3bb   : > { %s1429_s12 = smov %s1237_s15  ;;  %21 = sbr.rel (!%p19_p5) target bundleno = 3 (0x3), region = 134 }
 0x3c2   :  { %884 = vsyncpa [#allocation4], 1 }
 0x3c3   :  { %886 = vsyncpa [#allocation4 + $0x1], 1 }

</bundles_post_ra>
